<compile_context>
chip_gen: v5e
topology: v5e:2x2
jax: 0.10.0
libtpu: 0.0.40
codegen_flags: <defaults>
</compile_context>

<pallas_src>
import jax
import jax.numpy as jnp
from jax.experimental import pallas as pl
from jax.experimental.pallas import tpu as pltpu

LN_EPS = 1e-5


# ----------------------------------------------------------------------------- helpers

def _round_up(x, m):
    return (x + m - 1) // m * m


def _vmem_capacity_bytes():
    try:
        return int(pltpu.get_tpu_info().vmem_capacity_bytes)
    except Exception:
        return 64 * 1024 * 1024          # conservative default (v7x per-TC VMEM)


def _choose_tile(n, t_cap):
    """Largest multiple of 8 <= t_cap that divides n (no padding / no output slice copy);
    otherwise min(t_cap, round_up(n, 8))."""
    n8 = _round_up(max(n, 1), 8)
    t_cap = max(8, min(_round_up(t_cap, 8), n8))
    best = 0
    for t in range(8, t_cap + 1, 8):
        if n % t == 0:
            best = t
    return best if best else t_cap


def _single_buffered_spec(block_shape, index_map):
    """Constant-index block: fetched once, so request a single VMEM buffer (halves the
    resident footprint vs the default double-buffering)."""
    try:
        return pl.BlockSpec(block_shape, index_map,
                            pipeline_mode=pl.Buffered(buffer_count=1))
    except (TypeError, AttributeError):
        # Older API shape: fall back to default buffering (correctness unaffected).
        return pl.BlockSpec(block_shape, index_map)


def _layernorm(x, gamma, beta):
    # Two-pass LayerNorm in f32 (matches nn.LayerNorm, eps=1e-5); avoids the
    # E[x^2]-mean^2 cancellation issue for embeddings with non-trivial means.
    mean = jnp.mean(x, axis=-1, keepdims=True)
    xc = x - mean
    var = jnp.mean(xc * xc, axis=-1, keepdims=True)
    return xc * jax.lax.rsqrt(var + LN_EPS) * gamma + beta


# ----------------------------------------------------------------------------- kernels

def _resident_kernel(ids_ref, tbl_ref, gamma_ref, beta_ref, out_ref):
    """Small-table path: one fused multi-hot x combined-table MXU matmul per tile."""
    T = out_ref.shape[0]
    start = pl.multiple_of(pl.program_id(0) * T, 8)
    idx = ids_ref[pl.ds(start, T), :]                    # (T, 3) int32, offsets pre-applied
    tbl = tbl_ref[...]                                   # (R, H), native dtype
    R = tbl.shape[0]

    iota = jax.lax.broadcasted_iota(jnp.int32, (T, R), 1)
    mh = ((iota == idx[:, 0:1]) |
          (iota == idx[:, 1:2]) |
          (iota == idx[:, 2:3]))                         # (T, R) multi-hot (3 ones/row)
    x = jnp.dot(mh.astype(tbl.dtype), tbl,
                preferred_element_type=jnp.float32)      # (T, H) = tok + pos + seg

    y = _layernorm(x, gamma_ref[...], beta_ref[...])
    out_ref[...] = y.astype(out_ref.dtype)


def _gather_kernel(tok_ids_smem,                         # (n_pad,) int32 scalar-prefetch (SMEM)
                   tok_hbm,                              # (V, H) token table in HBM (pl.ANY)
                   ps_ids_ref,                           # (n_pad, 2) resident, offsets applied
                   ps_tbl_ref,                           # (P+2 padded, H) resident VMEM
                   gamma_ref, beta_ref,
                   out_ref,                              # (T, H)
                   gbuf, gsem):                          # VMEM (T, H) scratch, DMA sems (T,)
    """Large-vocab path: per-row DMA gather of token embeddings from HBM, overlapped with
    the pos+seg one-hot matmul."""
    T = out_ref.shape[0]
    base = pl.program_id(0) * T

    # Issue one row-gather DMA per token of this tile (HBM -> VMEM scratch).
    @pl.loop(0, T)
    def _issue(t):
        row = tok_ids_smem[base + t]
        pltpu.make_async_copy(tok_hbm.at[pl.ds(row, 1)],
                              gbuf.at[pl.ds(t, 1)],
                              gsem.at[t]).start()

    # While the gathers are in flight: positional + segment lookup as a fused one-hot
    # matmul against the small resident [pos; seg] table.
    start = pl.multiple_of(base, 8)
    ps_idx = ps_ids_ref[pl.ds(start, T), :]              # (T, 2) int32
    ps_tbl = ps_tbl_ref[...]
    Rps = ps_tbl.shape[0]
    iota = jax.lax.broadcasted_iota(jnp.int32, (T, Rps), 1)
    mh = (iota == ps_idx[:, 0:1]) | (iota == ps_idx[:, 1:2])
    ps_emb = jnp.dot(mh.astype(ps_tbl.dtype), ps_tbl,
                     preferred_element_type=jnp.float32)  # (T, H)

    # Wait for all row gathers of this tile.
    @pl.loop(0, T)
    def _wait(t):
        pltpu.make_async_copy(tok_hbm.at[pl.ds(0, 1)],
                              gbuf.at[pl.ds(t, 1)],
                              gsem.at[t]).wait()

    x = gbuf[...].astype(jnp.float32) + ps_emb
    y = _layernorm(x, gamma_ref[...], beta_ref[...])
    out_ref[...] = y.astype(out_ref.dtype)


# ----------------------------------------------------------------------------- wrapper

def embedding_layer(input_ids, token_type_ids, position_ids,
                    tok_table, seg_table, pos_table, gamma, beta,
                    *, tokens_per_step=512, out_dtype=jnp.float32,
                    force_hbm_gather=False):
    B, S = input_ids.shape
    V, H = tok_table.shape
    P = pos_table.shape[0]
    n = B * S

    if token_type_ids is None:
        token_type_ids = jnp.zeros((B, S), dtype=jnp.int32)
    if position_ids is None:
        position_ids = jnp.broadcast_to(jnp.arange(S, dtype=jnp.int32)[None, :], (B, S))

    tok_ids = input_ids.reshape(n).astype(jnp.int32)
    seg_ids = token_type_ids.reshape(n).astype(jnp.int32)
    pos_ids = position_ids.reshape(n).astype(jnp.int32)

    gamma2 = gamma.reshape(1, H).astype(jnp.float32)
    beta2 = beta.reshape(1, H).astype(jnp.float32)

    itemsize = jnp.dtype(tok_table.dtype).itemsize
    cap = _vmem_capacity_bytes()
    H128 = _round_up(H, 128)
    R = V + P + 2                                         # combined table rows

    def _resident_estimate(T):
        n_pad_e = _round_up(n, T)
        ids_bytes = _round_up(n_pad_e, 8) * 128 * 4       # (n_pad, 3) int32, lane-padded
        tbl_bytes = _round_up(R, 8) * H128 * itemsize     # combined table, single buffer
        out_bytes = 2 * T * H128 * 4                      # double-buffered output tile
        onehot_bytes = 2 * T * _round_up(R, 128) * 4      # multi-hot + compare temps
        work_bytes = 4 * T * H128 * 4                     # x / centered / normalized temps
        param_bytes = 2 * 8 * H128 * 4
        return (ids_bytes + tbl_bytes + out_bytes + onehot_bytes
                + work_bytes + param_bytes)

    # Path choice: the one-hot MXU gather only pays off for small tables; also gate on
    # per-generation VMEM capacity (v7x: 64 MiB, v5e/v6e: 128 MiB).
    MAX_ONEHOT_ROWS = 1024
    T_prov = min(tokens_per_step, _round_up(n, 8))
    use_resident = ((not force_hbm_gather)
                    and R <= MAX_ONEHOT_ROWS
                    and _resident_estimate(T_prov) <= 0.40 * cap)

    if use_resident:
        T = _choose_tile(n, tokens_per_step)
        n_pad = _round_up(n, T)
        G = n_pad // T

        # Pack all three id streams into one resident array, offsets pre-applied into the
        # combined [tok; pos; seg] table.
        comb_ids = jnp.stack([tok_ids, pos_ids + V, seg_ids + V + P], axis=1)   # (n, 3)
        if n_pad != n:
            comb_ids = jnp.pad(comb_ids, ((0, n_pad - n), (0, 0)))

        R_pad = _round_up(R, 8)
        comb_tbl = jnp.concatenate(
            [tok_table,
             pos_table.astype(tok_table.dtype),
             seg_table.astype(tok_table.dtype)], axis=0)
        if R_pad != R:
            comb_tbl = jnp.pad(comb_tbl, ((0, R_pad - R), (0, 0)))

        vmem_limit = int(min(cap, max(32 << 20, 2 * _resident_estimate(T) + (8 << 20))))

        grid_spec = pl.GridSpec(
            grid=(G,),
            in_specs=[
                _single_buffered_spec((n_pad, 3), lambda i: (0, 0)),   # packed ids, resident
                _single_buffered_spec((R_pad, H), lambda i: (0, 0)),   # combined table
                _single_buffered_spec((1, H), lambda i: (0, 0)),       # gamma
                _single_buffered_spec((1, H), lambda i: (0, 0)),       # beta
            ],
            out_specs=pl.BlockSpec((T, H), lambda i: (i, 0)),
        )
        out = pl.pallas_call(
            _resident_kernel,
            grid_spec=grid_spec,
            out_shape=jax.ShapeDtypeStruct((n_pad, H), out_dtype),
            compiler_params=pltpu.CompilerParams(
                dimension_semantics=("parallel",),
                vmem_limit_bytes=vmem_limit),
        )(comb_ids, comb_tbl, gamma2, beta2)

    else:
        # HBM row-gather path: token table never enters VMEM whole.
        T = _choose_tile(n, min(tokens_per_step, 128))    # one DMA semaphore per row
        n_pad = _round_up(n, T)
        G = n_pad // T

        tok_ids_p = tok_ids
        ps_ids = jnp.stack([pos_ids, seg_ids + P], axis=1)             # (n, 2)
        if n_pad != n:
            tok_ids_p = jnp.pad(tok_ids_p, (0, n_pad - n))
            ps_ids = jnp.pad(ps_ids, ((0, n_pad - n), (0, 0)))

        Rps = P + 2
        Rps_pad = _round_up(Rps, 8)
        ps_tbl = jnp.concatenate(
            [pos_table, seg_table.astype(pos_table.dtype)], axis=0)
        if Rps_pad != Rps:
            ps_tbl = jnp.pad(ps_tbl, ((0, Rps_pad - Rps), (0, 0)))

        gather_est = (_round_up(n_pad, 8) * 128 * 4                    # resident (n_pad, 2) ids
                      + Rps_pad * H128 * jnp.dtype(ps_tbl.dtype).itemsize
                      + T * H128 * itemsize                            # gather scratch
                      + 2 * T * H128 * 4                               # output double-buffer
                      + 2 * T * _round_up(Rps_pad, 128) * 4            # one-hot temps
                      + 4 * T * H128 * 4
                      + 2 * 8 * H128 * 4)
        vmem_limit = int(min(cap, max(32 << 20, 2 * gather_est + (8 << 20))))

        grid_spec = pltpu.PrefetchScalarGridSpec(
            num_scalar_prefetch=1,                                     # token ids -> SMEM
            grid=(G,),
            in_specs=[
                pl.BlockSpec(memory_space=pl.ANY),                     # token table in HBM
                _single_buffered_spec((n_pad, 2), lambda i, ids: (0, 0)),
                _single_buffered_spec((Rps_pad, H), lambda i, ids: (0, 0)),
                _single_buffered_spec((1, H), lambda i, ids: (0, 0)),
                _single_buffered_spec((1, H), lambda i, ids: (0, 0)),
            ],
            out_specs=pl.BlockSpec((T, H), lambda i, ids: (i, 0)),
            scratch_shapes=[pltpu.VMEM((T, H), tok_table.dtype),
                            pltpu.SemaphoreType.DMA((T,))],
        )
        out = pl.pallas_call(
            _gather_kernel,
            grid_spec=grid_spec,
            out_shape=jax.ShapeDtypeStruct((n_pad, H), out_dtype),
            compiler_params=pltpu.CompilerParams(
                dimension_semantics=("arbitrary",),
                vmem_limit_bytes=vmem_limit),
        )(tok_ids_p, tok_table, ps_ids, ps_tbl, gamma2, beta2)

    if n_pad != n:
        out = out[:n]
    return out.reshape(B, S, H)


# ----------------------------------------------------------------------------- reference

def reference(input_ids, token_type_ids, position_ids,
              tok_table, seg_table, pos_table, gamma, beta):
    x = (tok_table[input_ids] + seg_table[token_type_ids] + pos_table[position_ids])
    mean = jnp.mean(x, axis=-1, keepdims=True)
    var = jnp.mean(jnp.square(x - mean), axis=-1, keepdims=True)
    return (x - mean) * jax.lax.rsqrt(var + LN_EPS) * gamma + beta


if __name__ == "__main__":
    # Small, BERT-like shapes.
    VOCAB, NH, MAX_POS = 64, 128, 16
    B, S = 2, 8

    key = jax.random.PRNGKey(0)
    k_tok, k_seg, k_pos, k_ids, k_tt = jax.random.split(key, 5)

    tok_table = jax.random.normal(k_tok, (VOCAB, NH), dtype=jnp.float32)
    seg_table = jax.random.normal(k_seg, (2, NH), dtype=jnp.float32)
    pos_table = jax.random.normal(k_pos, (MAX_POS, NH), dtype=jnp.float32)
    gamma = jnp.ones((NH,), dtype=jnp.float32)
    beta = jnp.zeros((NH,), dtype=jnp.float32)

    input_ids = jax.random.randint(k_ids, (B, S), 0, VOCAB, dtype=jnp.int32)
    token_type_ids = jax.random.randint(k_tt, (B, S), 0, 2, dtype=jnp.int32)
    position_ids = jnp.broadcast_to(jnp.arange(S, dtype=jnp.int32)[None, :], (B, S))

    ref = reference(input_ids, token_type_ids, position_ids,
                    tok_table, seg_table, pos_table, gamma, beta)

    # 1) resident (VMEM table) path, single tile.
    out = jax.block_until_ready(
        embedding_layer(input_ids, token_type_ids, position_ids,
                        tok_table, seg_table, pos_table, gamma, beta))
    assert out.shape == (B, S, NH)
    assert jnp.allclose(out, ref, atol=1e-5, rtol=1e-5), "resident path mismatch"

    # 2) resident path with multiple grid steps (T=8 -> G=2).
    out2 = jax.block_until_ready(
        embedding_layer(input_ids, token_type_ids, position_ids,
                        tok_table, seg_table, pos_table, gamma, beta,
                        tokens_per_step=8))
    assert jnp.allclose(out2, ref, atol=1e-5, rtol=1e-5), "multi-tile mismatch"

    # 3) HBM DMA row-gather path (what a 30522-row vocab takes), forced at small shapes.
    out3 = jax.block_until_ready(
        embedding_layer(input_ids, token_type_ids, position_ids,
                        tok_table, seg_table, pos_table, gamma, beta,
                        tokens_per_step=8, force_hbm_gather=True))
    assert jnp.allclose(out3, ref, atol=1e-5, rtol=1e-5), "hbm gather path mismatch"

    print("KERNEL_OK")
</pallas_src>

<mosaic_0001>
module attributes {stable_mosaic.version = 11 : i64} {
  func.func @_resident_kernel(%arg0: i32, %arg1: memref<16x3xi32, #tpu.memory_space<vmem>>, %arg2: memref<88x128xf32, #tpu.memory_space<vmem>>, %arg3: memref<1x128xf32, #tpu.memory_space<vmem>>, %arg4: memref<1x128xf32, #tpu.memory_space<vmem>>, %arg5: memref<16x128xf32, #tpu.memory_space<vmem>>) attributes {dimension_semantics = [#tpu.dimension_semantics<parallel>], iteration_bounds = array<i64: 1>, scalar_prefetch = 0 : i64, scratch_operands = 0 : i64, tpu.core_type = #tpu.core_type<tc>, window_params = [{pipeline_mode = #tpu.pipeline_mode<synchronous>, transform_indices = @transform_0, window_bounds = array<i64: 16, 3>}, {pipeline_mode = #tpu.pipeline_mode<synchronous>, transform_indices = @transform_1, window_bounds = array<i64: 88, 128>}, {pipeline_mode = #tpu.pipeline_mode<synchronous>, transform_indices = @transform_2, window_bounds = array<i64: 1, 128>}, {pipeline_mode = #tpu.pipeline_mode<synchronous>, transform_indices = @transform_3, window_bounds = array<i64: 1, 128>}, {transform_indices = @transform_4, window_bounds = array<i64: 16, 128>}]} {
    %c16_i32 = arith.constant 16 : i32
    %0 = arith.muli %arg0, %c16_i32 : i32
    %1 = tpu.assume_multiple %0, 8 : i32
    %2 = arith.index_cast %1 : i32 to index
    %c0 = arith.constant 0 : index
    %3 = vector.load %arg1[%2, %c0] : memref<16x3xi32, #tpu.memory_space<vmem>>, vector<16x3xi32>
    %c0_0 = arith.constant 0 : index
    %c0_1 = arith.constant 0 : index
    %4 = vector.load %arg2[%c0_0, %c0_1] : memref<88x128xf32, #tpu.memory_space<vmem>>, vector<88x128xf32>
    %5 = tpu.iota {dimensions = array<i32: 1>} : vector<16x88xi32>
    %6 = vector.extract_strided_slice %3 {offsets = [0, 0], sizes = [16, 1], strides = [1, 1]} : vector<16x3xi32> to vector<16x1xi32>
    %7 = vector.broadcast %6 : vector<16x1xi32> to vector<16x88xi32>
    %8 = arith.cmpi eq, %5, %7 : vector<16x88xi32>
    %9 = vector.extract_strided_slice %3 {offsets = [0, 1], sizes = [16, 1], strides = [1, 1]} : vector<16x3xi32> to vector<16x1xi32>
    %10 = vector.broadcast %9 : vector<16x1xi32> to vector<16x88xi32>
    %11 = arith.cmpi eq, %5, %10 : vector<16x88xi32>
    %12 = arith.ori %8, %11 : vector<16x88xi1>
    %13 = vector.extract_strided_slice %3 {offsets = [0, 2], sizes = [16, 1], strides = [1, 1]} : vector<16x3xi32> to vector<16x1xi32>
    %14 = vector.broadcast %13 : vector<16x1xi32> to vector<16x88xi32>
    %15 = arith.cmpi eq, %5, %14 : vector<16x88xi32>
    %16 = arith.ori %12, %15 : vector<16x88xi1>
    %17 = arith.extui %16 : vector<16x88xi1> to vector<16x88xi32>
    %18 = arith.sitofp %17 : vector<16x88xi32> to vector<16x88xf32>
    %cst = arith.constant dense<0.000000e+00> : vector<16x128xf32>
    %19 = tpu.matmul %18, %4, %cst {dimension_numbers = #tpu.dot_dimension_numbers<[1], [0], [0], [1], [0, 0, 1, 1], [], []>} : vector<16x88xf32>, vector<88x128xf32>, vector<16x128xf32> -> vector<16x128xf32>
    %c0_2 = arith.constant 0 : index
    %c0_3 = arith.constant 0 : index
    %20 = vector.load %arg3[%c0_2, %c0_3] : memref<1x128xf32, #tpu.memory_space<vmem>>, vector<1x128xf32>
    %c0_4 = arith.constant 0 : index
    %c0_5 = arith.constant 0 : index
    %21 = vector.load %arg4[%c0_4, %c0_5] : memref<1x128xf32, #tpu.memory_space<vmem>>, vector<1x128xf32>
    %cst_6 = arith.constant dense<0.000000e+00> : vector<16xf32>
    %22 = vector.multi_reduction <add>, %19, %cst_6 [1] : vector<16x128xf32> to vector<16xf32>
    %23 = vector.shape_cast %22 : vector<16xf32> to vector<16x1xf32>
    %cst_7 = arith.constant 1.280000e+02 : f32
    %24 = vector.broadcast %cst_7 : f32 to vector<16x1xf32>
    %25 = arith.divf %23, %24 : vector<16x1xf32>
    %26 = vector.broadcast %25 : vector<16x1xf32> to vector<16x128xf32>
    %27 = arith.subf %19, %26 : vector<16x128xf32>
    %28 = arith.mulf %27, %27 : vector<16x128xf32>
    %cst_8 = arith.constant dense<0.000000e+00> : vector<16xf32>
    %29 = vector.multi_reduction <add>, %28, %cst_8 [1] : vector<16x128xf32> to vector<16xf32>
    %30 = vector.shape_cast %29 : vector<16xf32> to vector<16x1xf32>
    %cst_9 = arith.constant 1.280000e+02 : f32
    %31 = vector.broadcast %cst_9 : f32 to vector<16x1xf32>
    %32 = arith.divf %30, %31 : vector<16x1xf32>
    %cst_10 = arith.constant 9.99999974E-6 : f32
    %33 = vector.broadcast %cst_10 : f32 to vector<16x1xf32>
    %34 = arith.addf %32, %33 : vector<16x1xf32>
    %35 = math.rsqrt %34 : vector<16x1xf32>
    %36 = vector.broadcast %35 : vector<16x1xf32> to vector<16x128xf32>
    %37 = arith.mulf %27, %36 : vector<16x128xf32>
    %38 = vector.broadcast %20 : vector<1x128xf32> to vector<16x128xf32>
    %39 = arith.mulf %37, %38 : vector<16x128xf32>
    %40 = vector.broadcast %21 : vector<1x128xf32> to vector<16x128xf32>
    %41 = arith.addf %39, %40 : vector<16x128xf32>
    %c0_11 = arith.constant 0 : index
    %c0_12 = arith.constant 0 : index
    %42 = vector.load %arg5[%c0_11, %c0_12] : memref<16x128xf32, #tpu.memory_space<vmem>>, vector<16x128xf32>
    tpu.vector_store %arg5[%c0_11, %c0_12], %41 {strides = array<i32>} : memref<16x128xf32, #tpu.memory_space<vmem>>, vector<16x128xf32>,
    return
  }
  func.func @transform_0(%arg0: i32) -> (i32, i32) {
    %c0_i32 = arith.constant 0 : i32
    %c0_i32_0 = arith.constant 0 : i32
    %c0_i32_1 = arith.constant 0 : i32
    return %c0_i32, %c0_i32_0 : i32, i32
  }
  func.func @transform_1(%arg0: i32) -> (i32, i32) {
    %c0_i32 = arith.constant 0 : i32
    %c0_i32_0 = arith.constant 0 : i32
    %c0_i32_1 = arith.constant 0 : i32
    return %c0_i32, %c0_i32_0 : i32, i32
  }
  func.func @transform_2(%arg0: i32) -> (i32, i32) {
    %c0_i32 = arith.constant 0 : i32
    %c0_i32_0 = arith.constant 0 : i32
    %c0_i32_1 = arith.constant 0 : i32
    return %c0_i32, %c0_i32_0 : i32, i32
  }
  func.func @transform_3(%arg0: i32) -> (i32, i32) {
    %c0_i32 = arith.constant 0 : i32
    %c0_i32_0 = arith.constant 0 : i32
    %c0_i32_1 = arith.constant 0 : i32
    return %c0_i32, %c0_i32_0 : i32, i32
  }
  func.func @transform_4(%arg0: i32) -> (i32, i32) {
    %c0_i32 = arith.constant 0 : i32
    %c0_i32_0 = arith.constant 0 : i32
    return %arg0, %c0_i32 : i32, i32
  }
}

</mosaic_0001>

<bundles_post_ra>
// kernel: tpu_custom_call.1
= control target key start
LH: loop header
LB: loop body
LE: loop exit
PB: predicated region body
PF: predicated region fallthrough
CT: control target
= control target key end

     0   :  { %9 = vsyncpa [#allocation3], 0  ;;  %s339_s0 = inlined_call_operand.vmem [shape: s32[16,3], index: 0, kind: input, shape index: {}]   ;;  %s340_s1 = inlined_call_operand.hbm [shape: f32[88,128], index: 1, kind: input, shape index: {}]   ;;  %s341_s2 = inlined_call_operand.vmem [shape: f32[1,128], index: 2, kind: input, shape index: {}]   ;;  %s342_s3 = inlined_call_operand.vmem [shape: f32[1,128], index: 3, kind: input, shape index: {}]   ;;  %s343_s4 = inlined_call_operand.hbm [shape: f32[16,128], index: 4, kind: output, shape index: {}]  }
   0x1   :  { %10 = vsyncpa [#allocation4], 0  ;;  %s17_s17 = sshll.u32 %s340_s1, 4  ;;  %s281_s18 = smov [#allocation2]   ;;  %s18_s17 = int_to_ptr.hbm [resolvable:$true] %s17_s17 }
   0x2   :  { %s19_s19 = sshll.u32 %s281_s18, 4  ;;  %s282_s20 = smov 128   ;;  %s20_s19 = int_to_ptr.vmem [resolvable:$true] %s19_s19 }
   0x3   :  { %s283_s21 = smov 8  }
   0x4   :  { %25 = dma.hbm_to_vmem [thread:$0]  %s18_s17, 1408, %s20_s19, [#allocation3], %s282_s20, %s282_s20, %s283_s21  }
   0x5   :  { %277 = dma.done.wait [#allocation3], 1408  }
   0x6   :  { %278 = vsyncadd [#allocation3], 4294965888  ;;  %v284_v0 = vmov 1   ;;  %v285_v1 = vmov 0   ;;  %v286_v2 = vmov 2   ;;  %v36_v3 = vld [vmem:[%s339_s0] sm:$0xff]  ;;  %v49_v16 = vlaneseq }
   0x7   :  { %218 = vset.pattern.permute.xlu1 %v284_v0  ;;  %217 = vset.pattern.permute.xlu0 %v285_v1  ;;  %v48_v4 = vld [vmem:[#allocation2 + $0x50] sm:$0xff]  ;;  %v47_v5 = vld [vmem:[#allocation2 + $0x48] sm:$0xff]  ;;  %v46_v6 = vld [vmem:[#allocation2 + $0x40] sm:$0xff]  ;;  %vm83_vm4 = vcmask 719872   ;;  %v287_v21 = vmov 0.0   ;;  %v288_v29 = vmov 128.0  }
   0x8   :  { %219 = vset.pattern.permute.xlu2 %v286_v2  ;;  %60 = vperm.xlu1 %218, %v36_v3   ;;  %v45_v7 = vld [vmem:[#allocation2 + $0x38] sm:$0xff]  ;;  %v37_v8 = vld [vmem:[%s339_s0 + $0x8] sm:$0xff]  ;;  %v44_v9 = vld [vmem:[#allocation2 + $0x30] sm:$0xff]  ;;  %v50_v17 = vand.u32 127, %v49_v16  ;;  %223 = vrcp.f32 %v288_v29  ;;  %s289_s28 = smov [#allocation5]   ;;  %s180_s5 = sshll.u32 %s343_s4, 4  ;;  %s181_s5 = int_to_ptr.hbm [resolvable:$true] %s180_s5 }
   0x9   :  { %52 = vperm.xlu0 %217, %v36_v3   ;;  %70 = vperm.xlu2 %219, %v36_v3   ;;  %v43_v10 = vld [vmem:[#allocation2 + $0x28] sm:$0xff]  ;;  %v42_v11 = vld [vmem:[#allocation2 + $0x20] sm:$0xff]  ;;  %v41_v12 = vld [vmem:[#allocation2 + $0x18] sm:$0xff] }
   0xa   :  { %95 = vmatpush.msra.mxu0 %v48_v4  ;;  %197 = vmatpush.msra.mxu1 %v48_v4  ;;  %v40_v13 = vld [vmem:[#allocation2 + $0x10] sm:$0xff]  ;;  %v39_v14 = vld [vmem:[#allocation2 + $0x8] sm:$0xff]  ;;  %v38_v15 = vld [vmem:[#allocation2] sm:$0xff] }
   0xb   :  { %v221_v58 = vld [vmem:[%s341_s2] ss:$0 sm:$0xff]  ;;  %s178_s2 = sshll.u32 %s289_s28, 4  ;;  %s179_s2 = int_to_ptr.vmem [resolvable:$true] %s178_s2 }
   0xc   :  { %96 = vmatpush.msra.mxu0 %v47_v5  ;;  %198 = vmatpush.msra.mxu1 %v47_v5  ;;  %v222_v62 = vld [vmem:[%s342_s3] ss:$0 sm:$0xff] }
   0xe   :  { %97 = vmatpush.msra.mxu0 %v46_v6  ;;  %199 = vmatpush.msra.mxu1 %v46_v6  ;;  %v224_v30 = vpop.eup %223 }
   0xf   :  { %v120_v31 = vmul.f32 128.0, %v224_v30  ;;  %vm124_vm11 = vweird.f32 %v224_v30 }
  0x10   :  { %98 = vmatpush.msra.mxu0 %v45_v7  ;;  %63 = vperm.xlu1 %218, %v37_v8  }
  0x11   :  { %55 = vperm.xlu0 %217, %v37_v8   ;;  %73 = vperm.xlu2 %219, %v37_v8   ;;  %v121_v32 = vsub.f32 1.0, %v120_v31 }
  0x12   :  { %99 = vmatpush.msra.mxu0 %v44_v9  ;;  %200 = vmatpush.msra.mxu1 %v45_v7 }
  0x13   :  { %v122_v33 = vmul.f32 %v224_v30, %v121_v32 }
  0x14   :  { %201 = vmatpush.msra.mxu1 %v44_v9  ;;  %100 = vmatpush.msra.mxu0 %v43_v10 }
  0x15   :  { %v123_v34 = vadd.f32 %v224_v30, %v122_v33 }
  0x16   :  { %202 = vmatpush.msra.mxu1 %v43_v10  ;;  %101 = vmatpush.msra.mxu0 %v42_v11 }
  0x17   :  { %v125_v35 = vsel %vm124_vm11, %v224_v30, %v123_v34 }
  0x18   :  { %203 = vmatpush.msra.mxu1 %v42_v11  ;;  %102 = vmatpush.msra.mxu0 %v41_v12 }
  0x19   :  { %220 = vset.pattern.permute.xlu0 %v286_v2 }
  0x1a   :  { %204 = vmatpush.msra.mxu1 %v41_v12  ;;  %103 = vmatpush.msra.mxu0 %v40_v13 }
  0x1c   :  { %205 = vmatpush.msra.mxu1 %v40_v13  ;;  %104 = vmatpush.msra.mxu0 %v39_v14 }
  0x1e   :  { %206 = vmatpush.msra.mxu1 %v39_v14  ;;  %105 = vmatpush.msra.mxu0 %v38_v15 }
  0x20   :  { %207 = vmatpush.msra.mxu1 %v38_v15 }
  0x63   :  { %v71_v18 = vpop.permute.xlu2 %70 }
  0x64   :  { %vm75_vm0 = vcmp.eq.s32.totalorder %v50_v17, %v71_v18 }
  0x6b   :  { %v74_v23 = vpop.permute.xlu2 %73 }
  0x6c   :  { %vm76_vm8 = vcmp.eq.s32.totalorder %v50_v17, %v74_v23 }
  0x7a   :  { %v61_v19 = vpop.permute.xlu1 %60 }
  0x7b   :  { %v53_v20 = vpop.permute.xlu0 %52  ;;  %vm65_vm1 = vcmp.eq.s32.totalorder %v50_v17, %v61_v19 }
  0x7c   :  { %vm57_vm2 = vcmp.eq.s32.totalorder %v50_v17, %v53_v20 }
  0x7d   :  { %vm67_vm3 = vmor %vm57_vm2, %vm65_vm1 }
  0x7e   :  { %vm77_vm5 = vmor %vm67_vm3, %vm75_vm0 }
  0x7f   :  { %v193_v22 = vsel %vm77_vm5, 1.0, %v287_v21 }
  0x80   :  { %195 = vmatmul.msk.f32.vlgmr.msra.gmra.mxu0 %vm83_vm4, %v193_v22 }
  0x82   :  { %v64_v24 = vpop.permute.xlu1 %63 }
  0x83   :  { %v56_v25 = vpop.permute.xlu0 %55  ;;  %vm66_vm6 = vcmp.eq.s32.totalorder %v50_v17, %v64_v24 }
  0x84   :  { %vm58_vm7 = vcmp.eq.s32.totalorder %v50_v17, %v56_v25 }
  0x85   :  { %vm68_vm9 = vmor %vm58_vm7, %vm66_vm6 }
  0x86   :  { %vm78_vm10 = vmor %vm68_vm9, %vm76_vm8 }
  0x87   :  { %v194_v26 = vsel %vm78_vm10, 1.0, %v287_v21 }
  0x88   :  { %196 = vmatmul.msk.f32.vlgmr.msra.gmra.mxu1 %vm83_vm4, %v194_v26 }
  0xfd   :  { %v107_v27 = vpop.f32.mrf.mxu0 }
  0xfe   :  { %115 = vadd.xlane.f32.xlu0 %v107_v27 }
 0x105   :  { %v110_v28 = vpop.f32.mrf.mxu1 }
 0x106   :  { %117 = vadd.xlane.f32.xlu1 %v110_v28 }
 0x171   :  { %v116_v36 = vpop.xlane.xlu0 %115 }
 0x172   :  { %v126_v37 = vmul.f32 %v125_v35, %v116_v36 }
 0x174   :  { %v128_v38 = vsub.f32 %v107_v27, %v126_v37 }
 0x176   :  { %v130_v39 = vmul.f32 %v128_v38, %v128_v38 }
 0x178   :  { %132 = vadd.xlane.f32.xlu2 %v130_v39 }
 0x179   :  { %v118_v40 = vpop.xlane.xlu1 %117 }
 0x17a   :  { %v127_v41 = vmul.f32 %v125_v35, %v118_v40 }
 0x17c   :  { %v129_v42 = vsub.f32 %v110_v28, %v127_v41 }
 0x17e   :  { %v131_v43 = vmul.f32 %v129_v42, %v129_v42 }
 0x180   :  { %134 = vadd.xlane.f32.xlu2 %v131_v43 }
 0x1eb   :  { %v133_v44 = vpop.xlane.xlu2 %132 }
 0x1ec   :  { %v136_v45 = vmul.f32 %v133_v44, %v125_v35 }
 0x1ee   :  { %v138_v46 = vadd.f32 1e-05, %v136_v45 }
 0x1f0   :  { %225 = vrsqrt.f32 %v138_v46  ;;  %vm146_vm13 = vweird.f32 %v138_v46 }
 0x1f3   :  { %v135_v47 = vpop.xlane.xlu2 %134 }
 0x1f4   :  { %v137_v48 = vmul.f32 %v135_v47, %v125_v35 }
 0x1f6   :  { %v226_v49 = vpop.eup %225  ;;  %v139_v50 = vadd.f32 1e-05, %v137_v48 }
 0x1f7   :  { %v141_v51 = vmul.f32 %v226_v49, %v138_v46  ;;  %vm147_vm12 = vweird.f32 %v226_v49 }
 0x1f8   :  { %227 = vrsqrt.f32 %v139_v50  ;;  %vm148_vm14 = vmor %vm146_vm13, %vm147_vm12  ;;  %vm156_vm0 = vweird.f32 %v139_v50 }
 0x1f9   :  { %v142_v52 = vmul.f32 %v226_v49, %v141_v51 }
 0x1fb   :  { %v143_v53 = vmul.f32 0.5, %v142_v52 }
 0x1fd   :  { %v144_v54 = vsub.f32 1.5, %v143_v53 }
 0x1fe   :  { %v228_v55 = vpop.eup %227 }
 0x1ff   :  { %v145_v56 = vmul.f32 %v226_v49, %v144_v54  ;;  %v151_v57 = vmul.f32 %v228_v55, %v139_v50  ;;  %vm157_vm15 = vweird.f32 %v228_v55 }
 0x200   :  { %vm158_vm1 = vmor %vm156_vm0, %vm157_vm15 }
 0x201   :  { %v149_v59 = vsel %vm148_vm14, %v226_v49, %v145_v56  ;;  %v152_v60 = vmul.f32 %v228_v55, %v151_v57 }
 0x202   :  { %v160_v61 = vmul.f32 %v149_v59, %v128_v38 }
 0x203   :  { %v153_v63 = vmul.f32 0.5, %v152_v60 }
 0x204   :  { %v165_v0 = vmul.f32 %v221_v58, %v160_v61 }
 0x205   :  { %v154_v1 = vsub.f32 1.5, %v153_v63 }
 0x206   :  { %v170_v2 = vadd.f32 %v222_v62, %v165_v0 }
 0x207   :  { %v155_v3 = vmul.f32 %v228_v55, %v154_v1 }
 0x208   :  { %172 = vst [vmem:[#allocation5] sm:$0xff] %v170_v2 }
 0x209   :  { %v159_v4 = vsel %vm158_vm1, %v228_v55, %v155_v3 }
 0x20a   :  { %v161_v5 = vmul.f32 %v159_v4, %v129_v42 }
 0x20c   :  { %v166_v6 = vmul.f32 %v221_v58, %v161_v5 }
 0x20e   :  { %v171_v7 = vadd.f32 %v222_v62, %v166_v6 }
 0x210   :  { %173 = vst [vmem:[#allocation5 + $0x8] sm:$0xff] %v171_v7 }
 0x211   :  { %186 = dma.vmem_to_hbm [thread:$0]  %s179_s2, 256, %s181_s5, [#allocation4], %s282_s20, %s282_s20, %s283_s21  }
 0x212   :  { %279 = dma.done.wait [#allocation4], 256  }
 0x213   :  { %280 = vsyncadd [#allocation4], 4294967040 }
 0x214   :  { %191 = vsyncpa [#allocation3], 1 }
 0x215   :  { %192 = vsyncpa [#allocation4], 1 }

</bundles_post_ra>
